<compile_context>
chip_gen: v7x
topology: tpu7x:2x2x1
jax: 0.10.0
libtpu: 0.0.40
codegen_flags: <defaults>
</compile_context>

<pallas_src>
import functools

import jax
import jax.numpy as jnp
from jax.experimental import pallas as pl
from jax.experimental.pallas import tpu as pltpu


def _round_up(a: int, b: int) -> int:
    return (a + b - 1) // b * b


def classifier_kernel(x_ref, w1_ref, b1_ref, w2_ref, b2_ref, o_ref, *, vpu_lin2):
    # x_ref: (tm, H)    w1_ref: (H, H4)    b1_ref: (1, H4)
    # w2_ref: (O, H4) if vpu_lin2 else (H4, O)
    # b2_ref: (1, O)    o_ref: (tm, O)
    x = x_ref[...]

    # ---- lin1 + ReLU: MXU matmul with f32 accumulation, f32 epilogue ----
    h = jnp.dot(x, w1_ref[...], preferred_element_type=jnp.float32)
    h = h + b1_ref[...].astype(jnp.float32)
    h = jnp.maximum(h, 0.0)                       # (tm, H4), kept in f32

    b2 = b2_ref[...].astype(jnp.float32)          # (1, O)
    w2 = w2_ref[...].astype(jnp.float32)

    if vpu_lin2:
        # lin2 on the VPU: for each output class o (O is small & static),
        # y[:, o] = sum_k h[:, k] * w2t[o, k].  w2 arrives pre-transposed
        # (O, H4) so each class row is lane-contiguous (no in-kernel relayout).
        n_out = b2_ref.shape[1]
        cols = [
            jnp.sum(h * w2[o : o + 1, :], axis=1, keepdims=True)  # (tm, 1)
            for o in range(n_out)
        ]
        y = jnp.concatenate(cols, axis=1) + b2
    else:
        # Large H4/O: a real MXU matmul is the right tool.
        y = jnp.dot(h, w2, preferred_element_type=jnp.float32) + b2

    # TODO(synk): output last dim O << 128 lanes -> masked stores; a lane-dense
    # (transposed) output layout would need transposed compute and is not worth
    # it here since output traffic is << input traffic (O << H).
    o_ref[...] = y.astype(o_ref.dtype)


def classifier_forward(x, w1, b1, w2, b2, *, tm=None):
    N, H = x.shape
    H4 = w1.shape[1]
    O = w2.shape[1]
    assert w1.shape[0] == H and w2.shape[0] == H4
    assert b1.shape == (1, H4) and b2.shape == (1, O)

    # --- choose the row tile ---------------------------------------------
    if tm is None:
        tm = min(512, _round_up(N, 8))            # big tiles amortize overhead
        # keep >= 2 grid steps when possible so both v7x TensorCores get work
        if _round_up(N, tm) // tm < 2 and tm >= 16:
            tm = _round_up(tm // 2, 8)
    tm = max(8, _round_up(tm, 8))

    # --- pad the batch to a multiple of tm (tail handling) ----------------
    n_pad = _round_up(N, tm)
    if n_pad != N:
        x = jnp.pad(x, ((0, n_pad - N), (0, 0)))
    grid = (n_pad // tm,)

    # --- second-layer strategy --------------------------------------------
    use_vpu_lin2 = (O <= 16) and (H4 <= 512)
    w2_arg = w2.T if use_vpu_lin2 else w2          # (O, H4) for the VPU path
    w2_block = (O, H4) if use_vpu_lin2 else (H4, O)

    # --- VMEM budget (weights/biases are grid-invariant but double-buffered
    #     by the auto pipeline).  Only raise the limit when actually needed;
    #     cap at v7x's 64 MiB physical VMEM. --------------------------------
    itemsize = x.dtype.itemsize
    est_vmem = 2 * itemsize * (tm * H + tm * O + H * H4 + H4 * O + H4 + O) + (1 << 20)
    vmem_limit = None
    if est_vmem > (30 << 20):
        vmem_limit = min(int(est_vmem), 64 << 20)

    # --- advisory cost hint for the XLA scheduler --------------------------
    flops = 2 * n_pad * H * H4 + 2 * n_pad * H4 * O
    bytes_accessed = (
        (n_pad * H + H * H4 + H4 + H4 * O + O + n_pad * O) * itemsize
    )
    cost = pl.CostEstimate(flops=flops, transcendentals=0,
                           bytes_accessed=bytes_accessed)

    kernel = functools.partial(classifier_kernel, vpu_lin2=use_vpu_lin2)

    out = pl.pallas_call(
        kernel,
        out_shape=jax.ShapeDtypeStruct((n_pad, O), x.dtype),
        grid_spec=pltpu.PrefetchScalarGridSpec(
            num_scalar_prefetch=0,
            grid=grid,
            in_specs=[
                pl.BlockSpec((tm, H), lambda i: (i, 0)),     # x row tile
                pl.BlockSpec((H, H4), lambda i: (0, 0)),     # W1 (resident)
                pl.BlockSpec((1, H4), lambda i: (0, 0)),     # b1
                pl.BlockSpec(w2_block, lambda i: (0, 0)),    # W2 (resident)
                pl.BlockSpec((1, O), lambda i: (0, 0)),      # b2
            ],
            out_specs=pl.BlockSpec((tm, O), lambda i: (i, 0)),
        ),
        compiler_params=pltpu.CompilerParams(
            dimension_semantics=("parallel",),
            vmem_limit_bytes=vmem_limit,
        ),
        cost_estimate=cost,
    )(x, w1, b1, w2_arg, b2)

    return out[:N]


def reference_forward(x, w1, b1, w2, b2):
    h = jnp.maximum(x @ w1 + b1, 0.0)
    return h @ w2 + b2


if __name__ == "__main__":
    key = jax.random.PRNGKey(0)
    hidden_channels = 32
    out_channels = 4
    h4 = hidden_channels // 4

    k_x, k_w1, k_b1, k_w2, k_b2 = jax.random.split(key, 5)

    # Parameters stored transposed as [in, out] for the x @ W convention.
    w1 = jax.random.normal(k_w1, (hidden_channels, h4), dtype=jnp.float32) * 0.1
    b1 = jax.random.normal(k_b1, (1, h4), dtype=jnp.float32) * 0.1
    w2 = jax.random.normal(k_w2, (h4, out_channels), dtype=jnp.float32) * 0.1
    b2 = jax.random.normal(k_b2, (1, out_channels), dtype=jnp.float32) * 0.1

    # Main check: batch divisible by the chosen tile.
    N = 128
    x = jax.random.normal(k_x, (N, hidden_channels), dtype=jnp.float32)
    out = jax.block_until_ready(classifier_forward(x, w1, b1, w2, b2))
    ref = reference_forward(x, w1, b1, w2, b2)
    assert out.shape == (N, out_channels)
    assert jnp.allclose(out, ref, atol=1e-5, rtol=1e-5), "mismatch vs reference"

    # Tail-handling check: batch NOT divisible by the tile size.
    N2 = 100
    x2 = jax.random.normal(k_x, (N2, hidden_channels), dtype=jnp.float32)
    out2 = jax.block_until_ready(classifier_forward(x2, w1, b1, w2, b2))
    ref2 = reference_forward(x2, w1, b1, w2, b2)
    assert out2.shape == (N2, out_channels)
    assert jnp.allclose(out2, ref2, atol=1e-5, rtol=1e-5), "tail mismatch vs reference"

    print("KERNEL_OK")
</pallas_src>

<mosaic_0001>
module attributes {stable_mosaic.version = 11 : i64} {
  func.func @classifier_kernel(%arg0: i32, %arg1: memref<64x32xf32, #tpu.memory_space<vmem>>, %arg2: memref<32x8xf32, #tpu.memory_space<vmem>>, %arg3: memref<1x8xf32, #tpu.memory_space<vmem>>, %arg4: memref<4x8xf32, #tpu.memory_space<vmem>>, %arg5: memref<1x4xf32, #tpu.memory_space<vmem>>, %arg6: memref<64x4xf32, #tpu.memory_space<vmem>>) attributes {dimension_semantics = [#tpu.dimension_semantics<parallel>], iteration_bounds = array<i64: 2>, scalar_prefetch = 0 : i64, scratch_operands = 0 : i64, tpu.core_type = #tpu.core_type<tc>, window_params = [{transform_indices = @transform_0, window_bounds = array<i64: 64, 32>}, {pipeline_mode = #tpu.pipeline_mode<synchronous>, transform_indices = @transform_1, window_bounds = array<i64: 32, 8>}, {pipeline_mode = #tpu.pipeline_mode<synchronous>, transform_indices = @transform_2, window_bounds = array<i64: 1, 8>}, {pipeline_mode = #tpu.pipeline_mode<synchronous>, transform_indices = @transform_3, window_bounds = array<i64: 4, 8>}, {pipeline_mode = #tpu.pipeline_mode<synchronous>, transform_indices = @transform_4, window_bounds = array<i64: 1, 4>}, {transform_indices = @transform_5, window_bounds = array<i64: 64, 4>}]} {
    %c0 = arith.constant 0 : index
    %c0_0 = arith.constant 0 : index
    %0 = vector.load %arg1[%c0, %c0_0] : memref<64x32xf32, #tpu.memory_space<vmem>>, vector<64x32xf32>
    %c0_1 = arith.constant 0 : index
    %c0_2 = arith.constant 0 : index
    %1 = vector.load %arg2[%c0_1, %c0_2] : memref<32x8xf32, #tpu.memory_space<vmem>>, vector<32x8xf32>
    %cst = arith.constant dense<0.000000e+00> : vector<64x8xf32>
    %2 = tpu.matmul %0, %1, %cst {dimension_numbers = #tpu.dot_dimension_numbers<[1], [0], [0], [1], [0, 0, 1, 1], [], []>} : vector<64x32xf32>, vector<32x8xf32>, vector<64x8xf32> -> vector<64x8xf32>
    %c0_3 = arith.constant 0 : index
    %c0_4 = arith.constant 0 : index
    %3 = vector.load %arg3[%c0_3, %c0_4] : memref<1x8xf32, #tpu.memory_space<vmem>>, vector<1x8xf32>
    %4 = vector.broadcast %3 : vector<1x8xf32> to vector<64x8xf32>
    %5 = arith.addf %2, %4 : vector<64x8xf32>
    %cst_5 = arith.constant 0.000000e+00 : f32
    %6 = vector.broadcast %cst_5 : f32 to vector<64x8xf32>
    %7 = arith.maximumf %5, %6 : vector<64x8xf32>
    %c0_6 = arith.constant 0 : index
    %c0_7 = arith.constant 0 : index
    %8 = vector.load %arg5[%c0_6, %c0_7] : memref<1x4xf32, #tpu.memory_space<vmem>>, vector<1x4xf32>
    %c0_8 = arith.constant 0 : index
    %c0_9 = arith.constant 0 : index
    %9 = vector.load %arg4[%c0_8, %c0_9] : memref<4x8xf32, #tpu.memory_space<vmem>>, vector<4x8xf32>
    %10 = vector.extract_strided_slice %9 {offsets = [0, 0], sizes = [1, 8], strides = [1, 1]} : vector<4x8xf32> to vector<1x8xf32>
    %11 = vector.broadcast %10 : vector<1x8xf32> to vector<64x8xf32>
    %12 = arith.mulf %7, %11 : vector<64x8xf32>
    %cst_10 = arith.constant dense<0.000000e+00> : vector<64xf32>
    %13 = vector.multi_reduction <add>, %12, %cst_10 [1] : vector<64x8xf32> to vector<64xf32>
    %14 = vector.shape_cast %13 : vector<64xf32> to vector<64x1xf32>
    %15 = vector.extract_strided_slice %9 {offsets = [1, 0], sizes = [1, 8], strides = [1, 1]} : vector<4x8xf32> to vector<1x8xf32>
    %16 = vector.broadcast %15 : vector<1x8xf32> to vector<64x8xf32>
    %17 = arith.mulf %7, %16 : vector<64x8xf32>
    %cst_11 = arith.constant dense<0.000000e+00> : vector<64xf32>
    %18 = vector.multi_reduction <add>, %17, %cst_11 [1] : vector<64x8xf32> to vector<64xf32>
    %19 = vector.shape_cast %18 : vector<64xf32> to vector<64x1xf32>
    %20 = vector.extract_strided_slice %9 {offsets = [2, 0], sizes = [1, 8], strides = [1, 1]} : vector<4x8xf32> to vector<1x8xf32>
    %21 = vector.broadcast %20 : vector<1x8xf32> to vector<64x8xf32>
    %22 = arith.mulf %7, %21 : vector<64x8xf32>
    %cst_12 = arith.constant dense<0.000000e+00> : vector<64xf32>
    %23 = vector.multi_reduction <add>, %22, %cst_12 [1] : vector<64x8xf32> to vector<64xf32>
    %24 = vector.shape_cast %23 : vector<64xf32> to vector<64x1xf32>
    %25 = vector.extract_strided_slice %9 {offsets = [3, 0], sizes = [1, 8], strides = [1, 1]} : vector<4x8xf32> to vector<1x8xf32>
    %26 = vector.broadcast %25 : vector<1x8xf32> to vector<64x8xf32>
    %27 = arith.mulf %7, %26 : vector<64x8xf32>
    %cst_13 = arith.constant dense<0.000000e+00> : vector<64xf32>
    %28 = vector.multi_reduction <add>, %27, %cst_13 [1] : vector<64x8xf32> to vector<64xf32>
    %29 = vector.shape_cast %28 : vector<64xf32> to vector<64x1xf32>
    %30 = tpu.concatenate %14, %19, %24, %29 in 1 : vector<64x1xf32>, vector<64x1xf32>, vector<64x1xf32>, vector<64x1xf32> -> vector<64x4xf32>
    %31 = vector.broadcast %8 : vector<1x4xf32> to vector<64x4xf32>
    %32 = arith.addf %30, %31 : vector<64x4xf32>
    %c0_14 = arith.constant 0 : index
    %c0_15 = arith.constant 0 : index
    %33 = vector.load %arg6[%c0_14, %c0_15] : memref<64x4xf32, #tpu.memory_space<vmem>>, vector<64x4xf32>
    tpu.vector_store %arg6[%c0_14, %c0_15], %32 {strides = array<i32>} : memref<64x4xf32, #tpu.memory_space<vmem>>, vector<64x4xf32>,
    return
  }
  func.func @transform_0(%arg0: i32) -> (i32, i32) {
    %c0_i32 = arith.constant 0 : i32
    %c0_i32_0 = arith.constant 0 : i32
    return %arg0, %c0_i32 : i32, i32
  }
  func.func @transform_1(%arg0: i32) -> (i32, i32) {
    %c0_i32 = arith.constant 0 : i32
    %c0_i32_0 = arith.constant 0 : i32
    %c0_i32_1 = arith.constant 0 : i32
    return %c0_i32, %c0_i32_0 : i32, i32
  }
  func.func @transform_2(%arg0: i32) -> (i32, i32) {
    %c0_i32 = arith.constant 0 : i32
    %c0_i32_0 = arith.constant 0 : i32
    %c0_i32_1 = arith.constant 0 : i32
    return %c0_i32, %c0_i32_0 : i32, i32
  }
  func.func @transform_3(%arg0: i32) -> (i32, i32) {
    %c0_i32 = arith.constant 0 : i32
    %c0_i32_0 = arith.constant 0 : i32
    %c0_i32_1 = arith.constant 0 : i32
    return %c0_i32, %c0_i32_0 : i32, i32
  }
  func.func @transform_4(%arg0: i32) -> (i32, i32) {
    %c0_i32 = arith.constant 0 : i32
    %c0_i32_0 = arith.constant 0 : i32
    %c0_i32_1 = arith.constant 0 : i32
    return %c0_i32, %c0_i32_0 : i32, i32
  }
  func.func @transform_5(%arg0: i32) -> (i32, i32) {
    %c0_i32 = arith.constant 0 : i32
    %c0_i32_0 = arith.constant 0 : i32
    return %arg0, %c0_i32 : i32, i32
  }
}

</mosaic_0001>

<bundles_post_ra>
// kernel: tpu_custom_call.1
= control target key start
LH: loop header
LB: loop body
LE: loop exit
PB: predicated region body
PF: predicated region fallthrough
CT: control target
= control target key end

     0   :  { %s749_s18 = smov 0   ;;  %s926_s0 = inlined_call_operand.vmem [shape: f32[128,32], index: 0, kind: input, shape index: {}]   ;;  %s927_s1 = inlined_call_operand.vmem [shape: f32[32,8], index: 1, kind: input, shape index: {}]   ;;  %s928_s2 = inlined_call_operand.vmem [shape: f32[1,8], index: 2, kind: input, shape index: {}]   ;;  %s929_s3 = inlined_call_operand.vmem [shape: f32[4,8], index: 3, kind: input, shape index: {}]   ;;  %s930_s4 = inlined_call_operand.vmem [shape: f32[1,4], index: 4, kind: input, shape index: {}]   ;;  %s931_s5 = inlined_call_operand.vmem [shape: f32[128,4], index: 5, kind: output, shape index: {}]  }
   0x1 LB: > { %s638_s19 = sadd.s32 4294967295, %s717_s18   ;;  %p642_p0 = scmp.ge.s32.totalorder %s717_s18, 1  ;;  %s717_s18 = sphi %s749_s18, %s15_s18  }
   0x2   : > { %p188_p1 = scmp.lt.s32.totalorder %s717_s18, 3 }
   0x4   : > { %p189_p2 = pnand %p642_p0, %p188_p1 }
   0x5   : > { %v236_v0 = vld [vmem:[%s927_s1] sm:$0xff] (!%p189_p2)  ;;  %v237_v1 = vld [vmem:[%s927_s1 + $0x8] sm:$0xff] (!%p189_p2)  ;;  %v238_v2 = vld [vmem:[%s927_s1 + $0x10] sm:$0xff] (!%p189_p2)  ;;  %s643_s26 = sshll.u32 (!%p189_p2), %s638_s19, 3  ;;  %vm247_vm0 = vcmask (!%p189_p2), 261120   ;;  %v387_v14 = vlaneseq (!%p189_p2)  ;;  %vm399_vm1 = vcmask (!%p189_p2), 64512  }
   0x6   : > { %192 = sbr.rel (%p189_p2) target bundleno = 444 (0x1bc), region = 40  ;;  %v691_v3 = vpack.c.bf16 (!%p189_p2), %v237_v1, %v236_v0  ;;  %v239_v4 = vld [vmem:[%s927_s1 + $0x18] sm:$0xff] (!%p189_p2)  ;;  %p217_p3 = scmp.lt.s32.totalorder (!%p189_p2), %s643_s26, 15  ;;  %v788_v17 = vld [vmem:[%s928_s2] ss:$0 sm:$0xff] (!%p189_p2)  ;;  %vm532_vm2 = vcmask (!%p189_p2), 7168  }
   0x7   : > { %v695_v5 = vpack.c.bf16 (!%p189_p2), %v239_v4, %v238_v2  ;;  %v388_v15 = vshrl.u32 (!%p189_p2), %v387_v14, 7  ;;  %v386_v18 = vld [vmem:[%s929_s3] sm:$0xf] (!%p189_p2)  ;;  %vm541_vm3 = vcmask (!%p189_p2), 15360   ;;  %vm550_vm4 = vcmask (!%p189_p2), 23552  }
   0x8   : > { %692 = vmatprep.subr.bf16.mxu0 (!%p189_p2), %v691_v3  ;;  %699 = vmatprep.subr.bf16.mxu1 (!%p189_p2), %v691_v3  ;;  %vm573_vm5 = vcmask (!%p189_p2), 31744  }
   0x9   : > { %694 = vmatpush3.bf16.msra.mxu0 (!%p189_p2), %v691_v3  ;;  %701 = vmatpush3.bf16.msra.mxu1 (!%p189_p2), %v691_v3  ;;  %v389_v16 = vsub.s32 (!%p189_p2), 0, %v388_v15  ;;  %v426_v19 = vsub.s32 (!%p189_p2), 1, %v388_v15  ;;  %v462_v40 = vsub.s32 (!%p189_p2), 2, %v388_v15  ;;  %v498_v50 = vsub.s32 (!%p189_p2), 3, %v388_v15 }
   0xa   : > { %696 = vmatprep.subr.bf16.mxu0 (!%p189_p2), %v695_v5  ;;  %700 = vmatprep.subr.bf16.mxu1 (!%p189_p2), %v695_v5 }
   0xb   : > { %v795_v26 = vrot.slane (!%p189_p2), %v386_v18, %v389_v16  ;;  %v799_v31 = vrot.slane (!%p189_p2), %v386_v18, %v426_v19  ;;  %v807_v45 = vrot.slane (!%p189_p2), %v386_v18, %v462_v40  ;;  %v817_v55 = vrot.slane (!%p189_p2), %v386_v18, %v498_v50 }
   0xd   : > { %s933_s26 = smov (!%p217_p3, %s643_s26), 15  ;;  %698 = vmatpush3.bf16.msra.mxu0 %v695_v5  ;;  %702 = vmatpush3.bf16.msra.mxu1 %v695_v5 }
   0xe   : > { %s644_s29 = sshll.u32 %s933_s26, 3 }
   0xf   : > { %s220_s7 = scalar_lea.vmem %s926_s0, %s644_s29  ;;  %s883_s16 = scalar_lea.vmem %s931_s5, %s644_s29 }
  0x10   : > { %v228_v6 = vld [vmem:[%s220_s7] sm:$0xff]  ;;  %v229_v8 = vld [vmem:[%s220_s7 + $0x8] sm:$0xff]  ;;  %v230_v10 = vld [vmem:[%s220_s7 + $0x10] sm:$0xff] }
  0x11   : > { %v232_v7 = vld [vmem:[%s220_s7 + $0x20] sm:$0xff]  ;;  %v233_v9 = vld [vmem:[%s220_s7 + $0x28] sm:$0xff]  ;;  %679 = vmatprep.mubr.msk.f32.mxu0 %vm247_vm0, %v228_v6  ;;  %v234_v11 = vld [vmem:[%s220_s7 + $0x30] sm:$0xff] }
  0x12   : > { %685 = vmatprep.mubr.msk.f32.mxu1 %vm247_vm0, %v232_v7  ;;  %680 = vmatmul.mubr.msk.f32.vlgmr.msra.gmra.mrb[0].mxu0 %vm247_vm0, %v229_v8  ;;  %v231_v12 = vld [vmem:[%s220_s7 + $0x18] sm:$0xff] }
  0x13   : > { %686 = vmatmul.mubr.msk.f32.vlgmr.msra.gmra.mrb[0].mxu1 %vm247_vm0, %v233_v9  ;;  %682 = vmatprep.mubr.msk.f32.mxu0 %vm247_vm0, %v230_v10  ;;  %v235_v13 = vld [vmem:[%s220_s7 + $0x38] sm:$0xff] }
  0x14   : > { %688 = vmatprep.mubr.msk.f32.mxu1 %vm247_vm0, %v234_v11 }
  0x16   : > { %683 = vmatmul.mubr.msk.f32.gmra.mrb[2].mxu0 %vm247_vm0, %v231_v12 }
  0x17   : > { %689 = vmatmul.mubr.msk.f32.gmra.mrb[2].mxu1 %vm247_vm0, %v235_v13 }
  0xe5   : > { %v681_v20 = vpop.f32.mrb[0].mxu0 }
  0xe6   : > { %v687_v21 = vpop.f32.mrb[0].mxu1  ;;  %v344_v22 = vadd.f32 %v681_v20, %v788_v17  ;;  %v338_v24 = vpop.f32.mrb[1].mxu0 }
  0xe7   : > { %v364_v23 = vadd.f32 %v687_v21, %v788_v17  ;;  %v358_v25 = vpop.f32.mrb[1].mxu1  ;;  %v339_v27 = vadd.f32 %v788_v17, %v338_v24 }
  0xe8   : > { %v359_v28 = vadd.f32 %v788_v17, %v358_v25  ;;  %v378_v29 = vmax.f32 %v344_v22, 0.0 }
  0xe9   : > { %v382_v30 = vmax.f32 %v364_v23, 0.0  ;;  %v377_v32 = vmax.f32 %v339_v27, 0.0  ;;  %v684_v33 = vpop.f32.mrb[2].mxu0 }
  0xea   : > { %v690_v34 = vpop.f32.mrb[2].mxu1  ;;  %v392_v36 = vmul.f32 %v795_v26, %v378_v29  ;;  %v348_v37 = vpop.f32.mrb[3].mxu0  ;;  %v381_v39 = vmax.f32 %v359_v28, 0.0  ;;  %v429_v43 = vmul.f32 %v799_v31, %v378_v29  ;;  %v465_v53 = vmul.f32 %v807_v45, %v378_v29 }
  0xeb   : > { %v396_v35 = vmul.f32 %v795_v26, %v382_v30  ;;  %v368_v38 = vpop.f32.mrb[3].mxu1  ;;  %v391_v44 = vmul.f32 %v795_v26, %v377_v32  ;;  %v433_v48 = vmul.f32 %v799_v31, %v382_v30  ;;  %v428_v54 = vmul.f32 %v799_v31, %v377_v32 }
  0xec   : > { %v403_v42 = vsel %vm399_vm1, %v392_v36, 0.0  ;;  %v439_v46 = vsel %vm399_vm1, %v429_v43, 0.0  ;;  %v395_v49 = vmul.f32 %v795_v26, %v381_v39  ;;  %v475_v56 = vsel %vm399_vm1, %v465_v53, 0.0 }
  0xed   : > { %v415_v41 = vsel %vm399_vm1, %v396_v35, 0.0  ;;  %404 = vadd.xlane.f32.xlu0 %v403_v42  ;;  %v400_v47 = vsel %vm399_vm1, %v391_v44, 0.0  ;;  %v451_v51 = vsel %vm399_vm1, %v433_v48, 0.0  ;;  %v436_v57 = vsel %vm399_vm1, %v428_v54, 0.0 }
  0xee   : > { %416 = vadd.xlane.f32.xlu1 %v415_v41  ;;  %v412_v52 = vsel %vm399_vm1, %v395_v49, 0.0  ;;  %v469_v58 = vmul.f32 %v807_v45, %v382_v30  ;;  %v432_v59 = vmul.f32 %v799_v31, %v381_v39  ;;  %v354_v60 = vadd.f32 %v684_v33, %v788_v17 }
  0xef   : > { %v501_v63 = vmul.f32 %v817_v55, %v378_v29  ;;  %v464_v0 = vmul.f32 %v807_v45, %v377_v32  ;;  %v374_v2 = vadd.f32 %v690_v34, %v788_v17  ;;  %v505_v5 = vmul.f32 %v817_v55, %v382_v30 }
  0xf0   : > { %v487_v61 = vsel %vm399_vm1, %v469_v58, 0.0  ;;  %v448_v62 = vsel %vm399_vm1, %v432_v59, 0.0  ;;  %v380_v1 = vmax.f32 %v354_v60, 0.0  ;;  %v468_v6 = vmul.f32 %v807_v45, %v381_v39 }
  0xf1   : > { %401 = vadd.xlane.f32.xlu0 %v400_v47  ;;  %v511_v3 = vsel %vm399_vm1, %v501_v63, 0.0  ;;  %v472_v4 = vsel %vm399_vm1, %v464_v0, 0.0  ;;  %v384_v7 = vmax.f32 %v374_v2, 0.0  ;;  %v369_v9 = vadd.f32 %v788_v17, %v368_v38 }
  0xf2   : > { %440 = vadd.xlane.f32.xlu1 %v439_v46  ;;  %v394_v8 = vmul.f32 %v795_v26, %v380_v1  ;;  %v523_v10 = vsel %vm399_vm1, %v505_v5, 0.0  ;;  %v484_v11 = vsel %vm399_vm1, %v468_v6, 0.0  ;;  %v500_v12 = vmul.f32 %v817_v55, %v377_v32 }
  0xf3   : > { %v398_v14 = vmul.f32 %v795_v26, %v384_v7  ;;  %v349_v15 = vadd.f32 %v788_v17, %v348_v37  ;;  %v383_v16 = vmax.f32 %v369_v9, 0.0  ;;  %v504_v19 = vmul.f32 %v817_v55, %v381_v39 }
  0xf4   : > { %v409_v13 = vsel %vm399_vm1, %v394_v8, 0.0  ;;  %v508_v18 = vsel %vm399_vm1, %v500_v12, 0.0  ;;  %v431_v23 = vmul.f32 %v799_v31, %v380_v1  ;;  %v435_v27 = vmul.f32 %v799_v31, %v384_v7 }
  0xf5   : > { %413 = vadd.xlane.f32.xlu0 %v412_v52  ;;  %v421_v20 = vsel %vm399_vm1, %v398_v14, 0.0  ;;  %v379_v21 = vmax.f32 %v349_v15, 0.0  ;;  %v520_v22 = vsel %vm399_vm1, %v504_v19, 0.0  ;;  %v397_v24 = vmul.f32 %v795_v26, %v383_v16 }
  0xf6   : > { %452 = vadd.xlane.f32.xlu1 %v451_v51  ;;  %v445_v17 = vsel %vm399_vm1, %v431_v23, 0.0  ;;  %v457_v29 = vsel %vm399_vm1, %v435_v27, 0.0  ;;  %v467_v32 = vmul.f32 %v807_v45, %v380_v1  ;;  %v434_v33 = vmul.f32 %v799_v31, %v383_v16 }
  0xf7   : > { %v418_v25 = vsel %vm399_vm1, %v397_v24, 0.0  ;;  %v430_v28 = vmul.f32 %v799_v31, %v379_v21  ;;  %v471_v36 = vmul.f32 %v807_v45, %v384_v7  ;;  %v466_v37 = vmul.f32 %v807_v45, %v379_v21 }
  0xf8   : > { %v481_v34 = vsel %vm399_vm1, %v467_v32, 0.0  ;;  %v454_v35 = vsel %vm399_vm1, %v434_v33, 0.0  ;;  %v503_v40 = vmul.f32 %v817_v55, %v380_v1  ;;  %v470_v31 = vmul.f32 %v807_v45, %v383_v16 }
  0xf9   : > { %437 = vadd.xlane.f32.xlu0 %v436_v57  ;;  %v442_v30 = vsel %vm399_vm1, %v430_v28, 0.0  ;;  %v493_v38 = vsel %vm399_vm1, %v471_v36, 0.0  ;;  %v478_v39 = vsel %vm399_vm1, %v466_v37, 0.0  ;;  %v393_v43 = vmul.f32 %v795_v26, %v379_v21 }
  0xfa   : > { %476 = vadd.xlane.f32.xlu1 %v475_v56  ;;  %v517_v41 = vsel %vm399_vm1, %v503_v40, 0.0  ;;  %v490_v42 = vsel %vm399_vm1, %v470_v31, 0.0  ;;  %v502_v44 = vmul.f32 %v817_v55, %v379_v21  ;;  %v507_v48 = vmul.f32 %v817_v55, %v384_v7 }
  0xfb   : > { %v406_v46 = vsel %vm399_vm1, %v393_v43, 0.0  ;;  %v506_v45 = vmul.f32 %v817_v55, %v383_v16 }
  0xfc   : > { %v514_v47 = vsel %vm399_vm1, %v502_v44, 0.0  ;;  %v529_v49 = vsel %vm399_vm1, %v507_v48, 0.0 }
  0xfd   : > { %449 = vadd.xlane.f32.xlu0 %v448_v62  ;;  %v526_v50 = vsel %vm399_vm1, %v506_v45, 0.0 }
  0xfe   : > { %488 = vadd.xlane.f32.xlu1 %v487_v61  ;;  %v656_v61 = vld [vmem:[%s930_s4] ss:$0 sm:$0xff] }
 0x101   : > { %473 = vadd.xlane.f32.xlu0 %v472_v4 }
 0x102   : > { %512 = vadd.xlane.f32.xlu1 %v511_v3 }
 0x105   : > { %485 = vadd.xlane.f32.xlu0 %v484_v11 }
 0x106   : > { %524 = vadd.xlane.f32.xlu1 %v523_v10 }
 0x109   : > { %509 = vadd.xlane.f32.xlu0 %v508_v18 }
 0x10a   : > { %410 = vadd.xlane.f32.xlu1 %v409_v13 }
 0x10d   : > { %521 = vadd.xlane.f32.xlu0 %v520_v22 }
 0x10e   : > { %422 = vadd.xlane.f32.xlu1 %v421_v20 }
 0x111   : > { %419 = vadd.xlane.f32.xlu0 %v418_v25 }
 0x112   : > { %446 = vadd.xlane.f32.xlu1 %v445_v17 }
 0x115   : > { %443 = vadd.xlane.f32.xlu0 %v442_v30 }
 0x116   : > { %458 = vadd.xlane.f32.xlu1 %v457_v29 }
 0x119   : > { %455 = vadd.xlane.f32.xlu0 %v454_v35 }
 0x11a   : > { %482 = vadd.xlane.f32.xlu1 %v481_v34 }
 0x11d   : > { %479 = vadd.xlane.f32.xlu0 %v478_v39 }
 0x11e   : > { %494 = vadd.xlane.f32.xlu1 %v493_v38 }
 0x121   : > { %491 = vadd.xlane.f32.xlu0 %v490_v42 }
 0x122   : > { %518 = vadd.xlane.f32.xlu1 %v517_v41 }
 0x125   : > { %515 = vadd.xlane.f32.xlu0 %v514_v47 }
 0x126   : > { %407 = vadd.xlane.f32.xlu1 %v406_v46 }
 0x129   : > { %527 = vadd.xlane.f32.xlu0 %v526_v50 }
 0x12a   : > { %530 = vadd.xlane.f32.xlu1 %v529_v49 }
 0x17a   : > { %v405_v51 = vpop.xlane.xlu0 %404 }
 0x17b   : > { %v417_v26 = vpop.xlane.xlu1 %416 }
 0x17e   : > { %v402_v53 = vpop.xlane.xlu0 %401 }
 0x17f   : > { %v441_v52 = vpop.xlane.xlu1 %440 }
 0x180   : > { %v534_v60 = vsel %vm532_vm2, %v405_v51, %v441_v52 }
 0x182   : > { %v414_v56 = vpop.xlane.xlu0 %413 }
 0x183   : > { %v453_v54 = vpop.xlane.xlu1 %452 }
 0x184   : > { %v538_v3 = vsel %vm532_vm2, %v417_v26, %v453_v54 }
 0x186   : > { %v438_v58 = vpop.xlane.xlu0 %437 }
 0x187   : > { %v477_v57 = vpop.xlane.xlu1 %476  ;;  %v533_v9 = vsel %vm532_vm2, %v402_v53, %v438_v58 }
 0x188   : > { %v543_v62 = vsel %vm541_vm3, %v534_v60, %v477_v57 }
 0x18a   : > { %v450_v55 = vpop.xlane.xlu0 %449 }
 0x18b   : > { %v489_v59 = vpop.xlane.xlu1 %488  ;;  %v537_v15 = vsel %vm532_vm2, %v414_v56, %v450_v55 }
 0x18c   : > { %v547_v4 = vsel %vm541_vm3, %v538_v3, %v489_v59 }
 0x18e   : > { %v474_v0 = vpop.xlane.xlu0 %473 }
 0x18f   : > { %v513_v63 = vpop.xlane.xlu1 %512  ;;  %v542_v10 = vsel %vm541_vm3, %v533_v9, %v474_v0 }
 0x190   : > { %v552_v1 = vsel %vm550_vm4, %v543_v62, %v513_v63 }
 0x191   : > { %v566_v2 = vadd.f32 %v656_v61, %v552_v1 }
 0x192   : > { %v486_v6 = vpop.xlane.xlu0 %485 }
 0x193   : > { %575 = vst.msk [vmem:[%s883_s16 + $0x8] sm:$0xff] %vm573_vm5, %v566_v2  ;;  %v525_v5 = vpop.xlane.xlu1 %524  ;;  %v546_v16 = vsel %vm541_vm3, %v537_v15, %v486_v6 }
 0x194   : > { %v556_v7 = vsel %vm550_vm4, %v547_v4, %v525_v5 }
 0x195   : > { %v570_v8 = vadd.f32 %v656_v61, %v556_v7 }
 0x196   : > { %v510_v12 = vpop.xlane.xlu0 %509 }
 0x197   : > { %579 = vst.msk [vmem:[%s883_s16 + $0x28] sm:$0xff] %vm573_vm5, %v570_v8  ;;  %v411_v11 = vpop.xlane.xlu1 %410  ;;  %v551_v13 = vsel %vm550_vm4, %v542_v10, %v510_v12 }
 0x198   : > { %v565_v14 = vadd.f32 %v656_v61, %v551_v13 }
 0x19a   : > { %574 = vst.msk [vmem:[%s883_s16] sm:$0xff] %vm573_vm5, %v565_v14  ;;  %v522_v19 = vpop.xlane.xlu0 %521 }
 0x19b   : > { %v423_v18 = vpop.xlane.xlu1 %422  ;;  %v555_v20 = vsel %vm550_vm4, %v546_v16, %v522_v19 }
 0x19c   : > { %v569_v21 = vadd.f32 %v656_v61, %v555_v20 }
 0x19e   : > { %578 = vst.msk [vmem:[%s883_s16 + $0x20] sm:$0xff] %vm573_vm5, %v569_v21  ;;  %v420_v23 = vpop.xlane.xlu0 %419 }
 0x19f   : > { %v447_v22 = vpop.xlane.xlu1 %446 }
 0x1a0   : > { %v536_v30 = vsel %vm532_vm2, %v411_v11, %v447_v22 }
 0x1a2   : > { %v444_v17 = vpop.xlane.xlu0 %443 }
 0x1a3   : > { %v459_v24 = vpop.xlane.xlu1 %458 }
 0x1a4   : > { %v540_v31 = vsel %vm532_vm2, %v423_v18, %v459_v24 }
 0x1a6   : > { %v456_v27 = vpop.xlane.xlu0 %455 }
 0x1a7   : > { %v483_v25 = vpop.xlane.xlu1 %482  ;;  %v539_v41 = vsel %vm532_vm2, %v420_v23, %v456_v27 }
 0x1a8   : > { %v545_v32 = vsel %vm541_vm3, %v536_v30, %v483_v25 }
 0x1aa   : > { %v480_v29 = vpop.xlane.xlu0 %479 }
 0x1ab   : > { %v495_v28 = vpop.xlane.xlu1 %494 }
 0x1ac   : > { %v549_v43 = vsel %vm541_vm3, %v540_v31, %v495_v28 }
 0x1ae   : > { %v492_v34 = vpop.xlane.xlu0 %491 }
 0x1af   : > { %v519_v33 = vpop.xlane.xlu1 %518  ;;  %v548_v44 = vsel %vm541_vm3, %v539_v41, %v492_v34 }
 0x1b0   : > { %v554_v35 = vsel %vm550_vm4, %v545_v32, %v519_v33 }
 0x1b1   : > { %v568_v36 = vadd.f32 %v656_v61, %v554_v35 }
 0x1b2   : > { %v516_v38 = vpop.xlane.xlu0 %515 }
 0x1b3   : > { %577 = vst.msk [vmem:[%s883_s16 + $0x18] sm:$0xff] %vm573_vm5, %v568_v36  ;;  %v408_v37 = vpop.xlane.xlu1 %407 }
 0x1b4   : > { %v535_v39 = vsel %vm532_vm2, %v408_v37, %v444_v17 }
 0x1b5   : > { %v544_v40 = vsel %vm541_vm3, %v535_v39, %v480_v29 }
 0x1b6   : > { %v553_v42 = vsel %vm550_vm4, %v544_v40, %v516_v38  ;;  %v528_v48 = vpop.xlane.xlu0 %527 }
 0x1b7   : > { %v567_v46 = vadd.f32 %v656_v61, %v553_v42  ;;  %v531_v47 = vpop.xlane.xlu1 %530  ;;  %v557_v49 = vsel %vm550_vm4, %v548_v44, %v528_v48 }
 0x1b8   : > { %v558_v45 = vsel %vm550_vm4, %v549_v43, %v531_v47  ;;  %v571_v26 = vadd.f32 %v656_v61, %v557_v49 }
 0x1b9   : > { %576 = vst.msk [vmem:[%s883_s16 + $0x10] sm:$0xff] %vm573_vm5, %v567_v46  ;;  %v572_v50 = vadd.f32 %v656_v61, %v558_v45 }
 0x1ba   : > { %580 = vst.msk [vmem:[%s883_s16 + $0x30] sm:$0xff] %vm573_vm5, %v571_v26 }
 0x1bb   : > { %581 = vst.msk [vmem:[%s883_s16 + $0x38] sm:$0xff] %vm573_vm5, %v572_v50 }
 0x1bc PF: > { %s15_s18 = sadd.s32 1, %s717_s18  }
 0x1bd   : > { %p12_p4 = scmp.ge.s32.totalorder %s15_s18, 4  }
 0x1bf   :  { %14 = sbr.rel (!%p12_p4) target bundleno = 1 (0x1), region = 70 }

</bundles_post_ra>
